<compile_context>
chip_gen: v6e
topology: v6e:2x2x1
jax: 0.10.0
libtpu: 0.0.40
codegen_flags: <defaults>
</compile_context>

<pallas_src>
import math

import jax
import jax.numpy as jnp
import numpy as np
from jax.experimental import pallas as pl
from jax.experimental.pallas import tpu as pltpu


# ----------------------------------------------------------------------------
# Parameter construction (tiny arrays) — plain JAX glue on the host side.
# ----------------------------------------------------------------------------
def make_gabor_strfs(rates, scales, supn, supk, norm_strf=True):
    """Exact replica of GaborSTRFConv.strfs() for strf_type='real',
    separable=False, clamp_param=False. supn/supk must be odd."""
    n = jnp.arange(supn, dtype=jnp.float32)
    k = jnp.arange(supk, dtype=jnp.float32)
    n0, k0 = supn // 2, supk // 2
    nwind = 0.5 - 0.5 * jnp.cos(2.0 * math.pi * (n + 1.0) / (supn + 1.0))
    kwind = 0.5 - 0.5 * jnp.cos(2.0 * math.pi * (k + 1.0) / (supk + 1.0))
    wind = nwind[:, None] * kwind[None, :]
    inside = (rates[:, None, None] * (n - n0)[None, :, None]
              + scales[:, None, None] * (k - k0)[None, None, :])
    strf = jnp.cos(inside) * wind[None, :, :]
    if norm_strf:
        norm = jnp.sqrt(jnp.sum(strf ** 2, axis=(1, 2)))[:, None, None]
        strf = strf / norm
    return strf  # [nkern, supn, supk]


def make_gabor_factors(rates, scales, supn, supk, norm_strf=True):
    """Rank-2 separable factors of the real Gabor STRF:
         strf[m] = an[m]⊗ak[m] - bn[m]⊗bk[m]   (1/norm folded into an, bn)."""
    n = jnp.arange(supn, dtype=jnp.float32)
    k = jnp.arange(supk, dtype=jnp.float32)
    n0, k0 = supn // 2, supk // 2
    nwind = 0.5 - 0.5 * jnp.cos(2.0 * math.pi * (n + 1.0) / (supn + 1.0))
    kwind = 0.5 - 0.5 * jnp.cos(2.0 * math.pi * (k + 1.0) / (supk + 1.0))
    a = rates[:, None] * (n - n0)[None, :]    # (nkern, supn)
    b = scales[:, None] * (k - k0)[None, :]   # (nkern, supk)
    an = jnp.cos(a) * nwind[None, :]
    bn = jnp.sin(a) * nwind[None, :]
    ak = jnp.cos(b) * kwind[None, :]
    bk = jnp.sin(b) * kwind[None, :]
    if norm_strf:
        strf = an[:, :, None] * ak[:, None, :] - bn[:, :, None] * bk[:, None, :]
        norm = jnp.sqrt(jnp.sum(strf ** 2, axis=(1, 2)))
        an = an / norm[:, None]
        bn = bn / norm[:, None]
    return (an.astype(jnp.float32), bn.astype(jnp.float32),
            ak.astype(jnp.float32), bk.astype(jnp.float32))


def _pick_kernel_block(nkern, F):
    """Smallest divisor NK of nkern with NK*F >= 128 (lane-dense output slab);
    otherwise all kernels in one block."""
    divisors = [d for d in range(1, nkern + 1) if nkern % d == 0]
    for d in divisors:
        if d * F >= 128:
            return d
    return divisors[-1]


def _make_banded_freq_weights(ak, bk, F, NK):
    """Banded 'same'-conv weights for the frequency pass, with NK kernels folded
    into the output-lane dim:  W[mb, fin, j*F + fout] = tap[mb*NK+j, fin-fout+k0]
    (zero outside the band) so that  x(T,F) @ W(F, NK*F) == per-kernel 1-D conv."""
    nkern, supk = ak.shape
    k0 = supk // 2
    MB = nkern // NK
    fin = jnp.arange(F)[:, None]
    fout = jnp.arange(F)[None, :]
    dk = fin - fout + k0                       # (F, F)
    valid = (dk >= 0) & (dk < supk)
    dk_c = jnp.clip(dk, 0, supk - 1)

    def band(taps):
        w = jnp.where(valid[None, :, :], taps[:, dk_c], 0.0)       # (nkern, F, F)
        w = w.reshape(MB, NK, F, F).transpose(0, 2, 1, 3)          # (MB, F, NK, F)
        return w.reshape(MB, F, NK * F).astype(jnp.float32)

    return band(ak), band(bk)


def _make_time_tap_planes(an, bn, F, NK):
    """Per-lane time taps: P[mb, dn, j*F + f] = tap[mb*NK+j, dn]."""
    nkern, supn = an.shape
    MB = nkern // NK

    def fold(v):
        v = v.reshape(MB, NK, supn).transpose(0, 2, 1)             # (MB, supn, NK)
        return jnp.repeat(v, F, axis=-1).astype(jnp.float32)       # (MB, supn, NK*F)

    return fold(an), fold(bn)


# ----------------------------------------------------------------------------
# Pallas kernel: one (batch, kernel-block) per grid step.
# ----------------------------------------------------------------------------
def _make_kernel(supn, T, NKF):
    n0 = supn // 2

    def kernel(x_ref, wa_ref, wb_ref, an_ref, bn_ref, o_ref):
        x = x_ref[0]                                               # (T, F) f32

        # Frequency pass on the MXU: banded matmuls give lane-dense per-kernel
        # partials (cos- and sin-branches) for all NK kernels of this block.
        ya = jnp.dot(x, wa_ref[0], preferred_element_type=jnp.float32,
                     precision=jax.lax.Precision.HIGHEST)          # (T, NK*F)
        yb = jnp.dot(x, wb_ref[0], preferred_element_type=jnp.float32,
                     precision=jax.lax.Precision.HIGHEST)          # (T, NK*F)

        an = an_ref[0]                                             # (supn, NK*F)
        bn = bn_ref[0]
        row = jax.lax.broadcasted_iota(jnp.int32, (T, NKF), 0)     # time index

        # Time pass: 'same' zero-padded correlation along sublanes. One shared
        # roll per tap (all NK kernels at once), one halo mask per tap, and the
        # accumulator lives entirely in vregs (cos⊗cos − sin⊗sin).
        acc = an[n0:n0 + 1, :] * ya - bn[n0:n0 + 1, :] * yb        # center tap
        for dn in range(supn):
            s = dn - n0                     # out[t] needs y[t + s], zero OOB
            if s == 0:
                continue
            sa = pltpu.roll(ya, (-s) % T, axis=0)                  # XLU rotate
            sb = pltpu.roll(yb, (-s) % T, axis=0)
            contrib = an[dn:dn + 1, :] * sa - bn[dn:dn + 1, :] * sb
            valid = (row < T - s) if s > 0 else (row >= -s)
            acc = acc + jnp.where(valid, contrib, 0.0)

        o_ref[0, 0] = acc                                          # dense slab store

    return kernel


def gabor_strf_conv(sigspec, rates, scales, supn, supk, norm_strf=True):
    """sigspec: [B, T, F] (or [T, F]) float. Returns [B, nkern, T, F]
    (== F.conv2d(x[:,None], strfs[:,None], padding='same', stride=1))."""
    if sigspec.ndim == 2:
        sigspec = sigspec[None]
    if supk % 2 == 0:           # module odd-ifies supports in __init__
        supk += 1
    if supn % 2 == 0:
        supn += 1

    B, T, F = sigspec.shape
    nkern = rates.shape[0]
    x = sigspec.astype(jnp.float32)

    NK = _pick_kernel_block(nkern, F)
    MB = nkern // NK
    NKF = NK * F

    an, bn, ak, bk = make_gabor_factors(rates, scales, supn, supk, norm_strf)
    Wa, Wb = _make_banded_freq_weights(ak, bk, F, NK)              # (MB, F, NKF)
    An, Bn = _make_time_tap_planes(an, bn, F, NK)                  # (MB, supn, NKF)

    # Per-step VMEM footprint (x + Wa + Wb + An + Bn + output slab, all
    # double-buffered) is well under the 32 MiB scoped default, so no
    # vmem_limit_bytes override is set (leaves headroom on v7x's 64 MiB).
    # TODO(synk): for very long spectrograms (T >~ 8k frames) add a grid axis
    # that tiles only the OUTPUT over T while keeping the full (T, F) input
    # resident, so the time-axis halo never needs a DMA.
    out = pl.pallas_call(
        _make_kernel(supn, T, NKF),
        out_shape=jax.ShapeDtypeStruct((B, MB, T, NKF), jnp.float32),
        grid=(B, MB),
        in_specs=[
            pl.BlockSpec((1, T, F), lambda b, m: (b, 0, 0)),       # resident across m
            pl.BlockSpec((1, F, NKF), lambda b, m: (m, 0, 0)),     # cos freq band
            pl.BlockSpec((1, F, NKF), lambda b, m: (m, 0, 0)),     # sin freq band
            pl.BlockSpec((1, supn, NKF), lambda b, m: (m, 0, 0)),  # cos time taps
            pl.BlockSpec((1, supn, NKF), lambda b, m: (m, 0, 0)),  # sin time taps
        ],
        out_specs=pl.BlockSpec((1, 1, T, NKF), lambda b, m: (b, m, 0, 0)),
        compiler_params=pltpu.CompilerParams(
            dimension_semantics=("parallel", "parallel")),
    )(x, Wa, Wb, An, Bn)

    # Unfold the lane-packed kernel blocks back to [B, nkern, T, F]
    # (pure layout plumbing in the wrapper).
    out = out.reshape(B, MB, T, NK, F).transpose(0, 1, 3, 2, 4)
    return out.reshape(B, nkern, T, F)


if __name__ == "__main__":
    # Module hyper-params (supn=5, supk=5 are already odd, as the module requires).
    supn, supk, nkern = 5, 5, 4
    B, T, F = 2, 16, 16

    key = jax.random.PRNGKey(0)
    k_rates, k_scales, k_x = jax.random.split(key, 3)

    # Deterministic init mirroring __init__ (use_hz=False):
    #   rates ~ U[0,1)*pi/2 ; scales ~ (U[0,1)*2 - 1)*pi/2
    rates = jax.random.uniform(k_rates, (nkern,), jnp.float32) * (math.pi / 2.0)
    scales = (jax.random.uniform(k_scales, (nkern,), jnp.float32) * 2.0 - 1.0) * (math.pi / 2.0)

    # Batch of (real) spectra [Batch x Time x Frequency]
    sigspec = jax.random.normal(k_x, (B, T, F), jnp.float32)

    out = gabor_strf_conv(sigspec, rates, scales, supn, supk, norm_strf=True)
    out = jax.block_until_ready(out)

    # Reference: exactly what F.conv2d does (cross-correlation, zero pad, stride 1)
    # with the full (non-separated) normalized Gabor STRFs — this validates the
    # separable decomposition, the banded MXU weights and the lane-slab plumbing.
    strfs = make_gabor_strfs(rates, scales, supn, supk, norm_strf=True)
    ref = jax.lax.conv_general_dilated(
        sigspec[:, None, :, :], strfs[:, None, :, :],
        window_strides=(1, 1),
        padding=((supn // 2, supn // 2), (supk // 2, supk // 2)),
        dimension_numbers=("NCHW", "OIHW", "NCHW"))
    np.testing.assert_allclose(np.asarray(out), np.asarray(ref), rtol=1e-4, atol=1e-4)
    assert out.shape == (B, nkern, T, F)

    print("KERNEL_OK")
</pallas_src>

<mosaic_0001>
module attributes {stable_mosaic.version = 11 : i64} {
  func.func @kernel(%arg0: i32, %arg1: i32, %arg2: memref<1x16x16xf32, #tpu.memory_space<vmem>>, %arg3: memref<1x16x64xf32, #tpu.memory_space<vmem>>, %arg4: memref<1x16x64xf32, #tpu.memory_space<vmem>>, %arg5: memref<1x5x64xf32, #tpu.memory_space<vmem>>, %arg6: memref<1x5x64xf32, #tpu.memory_space<vmem>>, %arg7: memref<1x1x16x64xf32, #tpu.memory_space<vmem>>) attributes {dimension_semantics = [#tpu.dimension_semantics<parallel>, #tpu.dimension_semantics<parallel>], iteration_bounds = array<i64: 2, 1>, scalar_prefetch = 0 : i64, scratch_operands = 0 : i64, tpu.core_type = #tpu.core_type<tc>, window_params = [{transform_indices = @transform_0, window_bounds = array<i64: 1, 16, 16>}, {transform_indices = @transform_1, window_bounds = array<i64: 1, 16, 64>}, {transform_indices = @transform_2, window_bounds = array<i64: 1, 16, 64>}, {transform_indices = @transform_3, window_bounds = array<i64: 1, 5, 64>}, {transform_indices = @transform_4, window_bounds = array<i64: 1, 5, 64>}, {transform_indices = @transform_5, window_bounds = array<i64: 1, 1, 16, 64>}]} {
    %c0 = arith.constant 0 : index
    %c0_0 = arith.constant 0 : index
    %c0_1 = arith.constant 0 : index
    %0 = vector.load %arg2[%c0, %c0_0, %c0_1] : memref<1x16x16xf32, #tpu.memory_space<vmem>>, vector<1x16x16xf32>
    %1 = vector.shape_cast %0 : vector<1x16x16xf32> to vector<16x16xf32>
    %c0_2 = arith.constant 0 : index
    %c0_3 = arith.constant 0 : index
    %c0_4 = arith.constant 0 : index
    %2 = vector.load %arg3[%c0_2, %c0_3, %c0_4] : memref<1x16x64xf32, #tpu.memory_space<vmem>>, vector<1x16x64xf32>
    %3 = vector.shape_cast %2 : vector<1x16x64xf32> to vector<16x64xf32>
    %cst = arith.constant dense<0.000000e+00> : vector<16x64xf32>
    %4 = tpu.matmul %1, %3, %cst {dimension_numbers = #tpu.dot_dimension_numbers<[1], [0], [0], [1], [0, 0, 1, 1], [], []>, precision = #tpu.contract_precision<fp32>} : vector<16x16xf32>, vector<16x64xf32>, vector<16x64xf32> -> vector<16x64xf32>
    %c0_5 = arith.constant 0 : index
    %c0_6 = arith.constant 0 : index
    %c0_7 = arith.constant 0 : index
    %5 = vector.load %arg4[%c0_5, %c0_6, %c0_7] : memref<1x16x64xf32, #tpu.memory_space<vmem>>, vector<1x16x64xf32>
    %6 = vector.shape_cast %5 : vector<1x16x64xf32> to vector<16x64xf32>
    %cst_8 = arith.constant dense<0.000000e+00> : vector<16x64xf32>
    %7 = tpu.matmul %1, %6, %cst_8 {dimension_numbers = #tpu.dot_dimension_numbers<[1], [0], [0], [1], [0, 0, 1, 1], [], []>, precision = #tpu.contract_precision<fp32>} : vector<16x16xf32>, vector<16x64xf32>, vector<16x64xf32> -> vector<16x64xf32>
    %c0_9 = arith.constant 0 : index
    %c0_10 = arith.constant 0 : index
    %c0_11 = arith.constant 0 : index
    %8 = vector.load %arg5[%c0_9, %c0_10, %c0_11] : memref<1x5x64xf32, #tpu.memory_space<vmem>>, vector<1x5x64xf32>
    %9 = vector.shape_cast %8 : vector<1x5x64xf32> to vector<5x64xf32>
    %c0_12 = arith.constant 0 : index
    %c0_13 = arith.constant 0 : index
    %c0_14 = arith.constant 0 : index
    %10 = vector.load %arg6[%c0_12, %c0_13, %c0_14] : memref<1x5x64xf32, #tpu.memory_space<vmem>>, vector<1x5x64xf32>
    %11 = vector.shape_cast %10 : vector<1x5x64xf32> to vector<5x64xf32>
    %12 = tpu.iota {dimensions = array<i32: 0>} : vector<16x64xi32>
    %13 = vector.extract_strided_slice %9 {offsets = [2, 0], sizes = [1, 64], strides = [1, 1]} : vector<5x64xf32> to vector<1x64xf32>
    %14 = vector.broadcast %13 : vector<1x64xf32> to vector<16x64xf32>
    %15 = arith.mulf %14, %4 : vector<16x64xf32>
    %16 = vector.extract_strided_slice %11 {offsets = [2, 0], sizes = [1, 64], strides = [1, 1]} : vector<5x64xf32> to vector<1x64xf32>
    %17 = vector.broadcast %16 : vector<1x64xf32> to vector<16x64xf32>
    %18 = arith.mulf %17, %7 : vector<16x64xf32>
    %19 = arith.subf %15, %18 : vector<16x64xf32>
    %c2_i32 = arith.constant 2 : i32
    %20 = tpu.dynamic_rotate %4 by %c2_i32 dim 0 : vector<16x64xf32>, i32 -> vector<16x64xf32>
    %c2_i32_15 = arith.constant 2 : i32
    %21 = tpu.dynamic_rotate %7 by %c2_i32_15 dim 0 : vector<16x64xf32>, i32 -> vector<16x64xf32>
    %22 = vector.extract_strided_slice %9 {offsets = [0, 0], sizes = [1, 64], strides = [1, 1]} : vector<5x64xf32> to vector<1x64xf32>
    %23 = vector.broadcast %22 : vector<1x64xf32> to vector<16x64xf32>
    %24 = arith.mulf %23, %20 : vector<16x64xf32>
    %25 = vector.extract_strided_slice %11 {offsets = [0, 0], sizes = [1, 64], strides = [1, 1]} : vector<5x64xf32> to vector<1x64xf32>
    %26 = vector.broadcast %25 : vector<1x64xf32> to vector<16x64xf32>
    %27 = arith.mulf %26, %21 : vector<16x64xf32>
    %28 = arith.subf %24, %27 : vector<16x64xf32>
    %c2_i32_16 = arith.constant 2 : i32
    %29 = vector.broadcast %c2_i32_16 : i32 to vector<16x64xi32>
    %30 = arith.cmpi sge, %12, %29 : vector<16x64xi32>
    %cst_17 = arith.constant 0.000000e+00 : f32
    %31 = vector.broadcast %cst_17 : f32 to vector<16x64xf32>
    %32 = arith.select %30, %28, %31 : vector<16x64xi1>, vector<16x64xf32>
    %33 = arith.addf %19, %32 : vector<16x64xf32>
    %c1_i32 = arith.constant 1 : i32
    %34 = tpu.dynamic_rotate %4 by %c1_i32 dim 0 : vector<16x64xf32>, i32 -> vector<16x64xf32>
    %c1_i32_18 = arith.constant 1 : i32
    %35 = tpu.dynamic_rotate %7 by %c1_i32_18 dim 0 : vector<16x64xf32>, i32 -> vector<16x64xf32>
    %36 = vector.extract_strided_slice %9 {offsets = [1, 0], sizes = [1, 64], strides = [1, 1]} : vector<5x64xf32> to vector<1x64xf32>
    %37 = vector.broadcast %36 : vector<1x64xf32> to vector<16x64xf32>
    %38 = arith.mulf %37, %34 : vector<16x64xf32>
    %39 = vector.extract_strided_slice %11 {offsets = [1, 0], sizes = [1, 64], strides = [1, 1]} : vector<5x64xf32> to vector<1x64xf32>
    %40 = vector.broadcast %39 : vector<1x64xf32> to vector<16x64xf32>
    %41 = arith.mulf %40, %35 : vector<16x64xf32>
    %42 = arith.subf %38, %41 : vector<16x64xf32>
    %c1_i32_19 = arith.constant 1 : i32
    %43 = vector.broadcast %c1_i32_19 : i32 to vector<16x64xi32>
    %44 = arith.cmpi sge, %12, %43 : vector<16x64xi32>
    %cst_20 = arith.constant 0.000000e+00 : f32
    %45 = vector.broadcast %cst_20 : f32 to vector<16x64xf32>
    %46 = arith.select %44, %42, %45 : vector<16x64xi1>, vector<16x64xf32>
    %47 = arith.addf %33, %46 : vector<16x64xf32>
    %c15_i32 = arith.constant 15 : i32
    %48 = tpu.dynamic_rotate %4 by %c15_i32 dim 0 : vector<16x64xf32>, i32 -> vector<16x64xf32>
    %c15_i32_21 = arith.constant 15 : i32
    %49 = tpu.dynamic_rotate %7 by %c15_i32_21 dim 0 : vector<16x64xf32>, i32 -> vector<16x64xf32>
    %50 = vector.extract_strided_slice %9 {offsets = [3, 0], sizes = [1, 64], strides = [1, 1]} : vector<5x64xf32> to vector<1x64xf32>
    %51 = vector.broadcast %50 : vector<1x64xf32> to vector<16x64xf32>
    %52 = arith.mulf %51, %48 : vector<16x64xf32>
    %53 = vector.extract_strided_slice %11 {offsets = [3, 0], sizes = [1, 64], strides = [1, 1]} : vector<5x64xf32> to vector<1x64xf32>
    %54 = vector.broadcast %53 : vector<1x64xf32> to vector<16x64xf32>
    %55 = arith.mulf %54, %49 : vector<16x64xf32>
    %56 = arith.subf %52, %55 : vector<16x64xf32>
    %c15_i32_22 = arith.constant 15 : i32
    %57 = vector.broadcast %c15_i32_22 : i32 to vector<16x64xi32>
    %58 = arith.cmpi slt, %12, %57 : vector<16x64xi32>
    %cst_23 = arith.constant 0.000000e+00 : f32
    %59 = vector.broadcast %cst_23 : f32 to vector<16x64xf32>
    %60 = arith.select %58, %56, %59 : vector<16x64xi1>, vector<16x64xf32>
    %61 = arith.addf %47, %60 : vector<16x64xf32>
    %c14_i32 = arith.constant 14 : i32
    %62 = tpu.dynamic_rotate %4 by %c14_i32 dim 0 : vector<16x64xf32>, i32 -> vector<16x64xf32>
    %c14_i32_24 = arith.constant 14 : i32
    %63 = tpu.dynamic_rotate %7 by %c14_i32_24 dim 0 : vector<16x64xf32>, i32 -> vector<16x64xf32>
    %64 = vector.extract_strided_slice %9 {offsets = [4, 0], sizes = [1, 64], strides = [1, 1]} : vector<5x64xf32> to vector<1x64xf32>
    %65 = vector.broadcast %64 : vector<1x64xf32> to vector<16x64xf32>
    %66 = arith.mulf %65, %62 : vector<16x64xf32>
    %67 = vector.extract_strided_slice %11 {offsets = [4, 0], sizes = [1, 64], strides = [1, 1]} : vector<5x64xf32> to vector<1x64xf32>
    %68 = vector.broadcast %67 : vector<1x64xf32> to vector<16x64xf32>
    %69 = arith.mulf %68, %63 : vector<16x64xf32>
    %70 = arith.subf %66, %69 : vector<16x64xf32>
    %c14_i32_25 = arith.constant 14 : i32
    %71 = vector.broadcast %c14_i32_25 : i32 to vector<16x64xi32>
    %72 = arith.cmpi slt, %12, %71 : vector<16x64xi32>
    %cst_26 = arith.constant 0.000000e+00 : f32
    %73 = vector.broadcast %cst_26 : f32 to vector<16x64xf32>
    %74 = arith.select %72, %70, %73 : vector<16x64xi1>, vector<16x64xf32>
    %75 = arith.addf %61, %74 : vector<16x64xf32>
    %c0_27 = arith.constant 0 : index
    %c0_28 = arith.constant 0 : index
    %c0_29 = arith.constant 0 : index
    %c0_30 = arith.constant 0 : index
    %76 = vector.load %arg7[%c0_27, %c0_28, %c0_29, %c0_30] : memref<1x1x16x64xf32, #tpu.memory_space<vmem>>, vector<1x1x16x64xf32>
    %77 = vector.shape_cast %76 : vector<1x1x16x64xf32> to vector<16x64xf32>
    %78 = vector.shape_cast %75 : vector<16x64xf32> to vector<1x1x16x64xf32>
    tpu.vector_store %arg7[%c0_27, %c0_28, %c0_29, %c0_30], %78 {strides = array<i32>} : memref<1x1x16x64xf32, #tpu.memory_space<vmem>>, vector<1x1x16x64xf32>,
    return
  }
  func.func @transform_0(%arg0: i32, %arg1: i32) -> (i32, i32, i32) {
    %c0_i32 = arith.constant 0 : i32
    %c0_i32_0 = arith.constant 0 : i32
    %c0_i32_1 = arith.constant 0 : i32
    return %arg0, %c0_i32, %c0_i32_0 : i32, i32, i32
  }
  func.func @transform_1(%arg0: i32, %arg1: i32) -> (i32, i32, i32) {
    %c0_i32 = arith.constant 0 : i32
    %c0_i32_0 = arith.constant 0 : i32
    %c0_i32_1 = arith.constant 0 : i32
    return %arg1, %c0_i32, %c0_i32_0 : i32, i32, i32
  }
  func.func @transform_2(%arg0: i32, %arg1: i32) -> (i32, i32, i32) {
    %c0_i32 = arith.constant 0 : i32
    %c0_i32_0 = arith.constant 0 : i32
    %c0_i32_1 = arith.constant 0 : i32
    return %arg1, %c0_i32, %c0_i32_0 : i32, i32, i32
  }
  func.func @transform_3(%arg0: i32, %arg1: i32) -> (i32, i32, i32) {
    %c0_i32 = arith.constant 0 : i32
    %c0_i32_0 = arith.constant 0 : i32
    %c0_i32_1 = arith.constant 0 : i32
    return %arg1, %c0_i32, %c0_i32_0 : i32, i32, i32
  }
  func.func @transform_4(%arg0: i32, %arg1: i32) -> (i32, i32, i32) {
    %c0_i32 = arith.constant 0 : i32
    %c0_i32_0 = arith.constant 0 : i32
    %c0_i32_1 = arith.constant 0 : i32
    return %arg1, %c0_i32, %c0_i32_0 : i32, i32, i32
  }
  func.func @transform_5(%arg0: i32, %arg1: i32) -> (i32, i32, i32, i32) {
    %c0_i32 = arith.constant 0 : i32
    %c0_i32_0 = arith.constant 0 : i32
    %c0_i32_1 = arith.constant 0 : i32
    return %arg0, %arg1, %c0_i32, %c0_i32_0 : i32, i32, i32, i32
  }
}

</mosaic_0001>

<bundles_post_ra>
// kernel: tpu_custom_call.1
= control target key start
LH: loop header
LB: loop body
LE: loop exit
PB: predicated region body
PF: predicated region fallthrough
CT: control target
= control target key end

     0   :  { %s2388_s0 = inlined_call_operand.hbm [shape: f32[2,16,16], index: 0, kind: input, shape index: {}]   ;;  %s2389_s1 = inlined_call_operand.vmem [shape: f32[1,16,64], index: 1, kind: input, shape index: {}]   ;;  %s2390_s2 = inlined_call_operand.hbm [shape: f32[1,16,64], index: 2, kind: input, shape index: {}]   ;;  %s2391_s3 = inlined_call_operand.vmem [shape: f32[1,5,64], index: 3, kind: input, shape index: {}]   ;;  %s2392_s4 = inlined_call_operand.vmem [shape: f32[1,5,64], index: 4, kind: input, shape index: {}]   ;;  %s2393_s5 = inlined_call_operand.hbm [shape: f32[2,1,16,64], index: 5, kind: output, shape index: {}]  }
   0x1   :  { %2398 = sst [smem:[#allocation12_spill]] %s2390_s2 }
   0x2   :  { %10 = vsyncpa [#allocation3], 0 }
   0x3   :  { %12 = vsyncpa [#allocation3 + $0x1], 0 }
   0x4   :  { %13 = vsyncpa [#allocation6], 0 }
   0x5   :  { %14 = vsyncpa [#allocation4], 0 }
   0x6   :  { %16 = vsyncpa [#allocation4 + $0x1], 0  ;;  %s2054_s18 = smov 0   ;;  %s2056_s19 = smov 0  }
   0x7   :  { %s2058_s20 = smov 0   ;;  %s2060_s21 = smov 0  }
   0x8   :  { %s2062_s22 = smov 0   ;;  %s2064_s23 = smov 0  }
   0x9 LB: > { %s1646_s24 = sadd.s32 4294967295, %s2015_s23   ;;  %s1647_s25 = sadd.s32 4294967294, %s2015_s23   ;;  %s2015_s23 = sphi %s2064_s23, %s22_s23   ;;  %s2011_s22 = sphi %s2062_s22, %s2420_s22   ;;  %s2007_s21 = sphi %s2060_s21, %s2419_s21   ;;  %s2003_s20 = sphi %s2058_s20, %s2418_s20   ;;  %s1999_s19 = sphi %s2056_s19, %s2417_s19   ;;  %s1995_s18 = sphi %s2054_s18, %s2416_s18  }
   0xa   : > { %p54_p0 = scmp.ne.s32.totalorder %s1999_s19, %s1995_s18  ;;  %p2088_p1 = scmp.eq.s32.totalorder %s1646_s24, 0 }
   0xb   : > { %p2092_p2 = scmp.eq.s32.totalorder %s1646_s24, 1  ;;  %p190_p3 = scmp.eq.s32.totalorder %s1647_s25, 1 }
   0xc   : > { %p2098_p4 = por %p2088_p1, %p54_p0  ;;  %p1648_p5 = scmp.ge.s32.totalorder %s2015_s23, 1 }
   0xd   : > { %p2103_p6 = por %p190_p3, %p54_p0  ;;  %p197_p7 = scmp.lt.s32.totalorder %s2015_s23, 3 }
   0xe   : > { %s2401_s28 = scalar_select %p2098_p4, 1, 0 }
   0xf   : > { %s2402_s29 = scalar_select %p2103_p6, 1, 0 }
  0x10   : > { %p2108_p8 = pnand %p1648_p5, %p197_p7  ;;  %s2017_s6 = smov [#allocation5]  }
  0x11   : > { %s220_s7 = sshll.u32 %s2017_s6, 4  ;;  %s34_s9 = sadd.s32 1, %s2011_s22  ;;  %s221_s7 = int_to_ptr.vmem [resolvable:$true] %s220_s7 }
  0x12   : > { %p1808_p9 = pneg %p2108_p8  ;;  %s1888_s10 = scalar_lea.vmem %s221_s7, 256 }
  0x13   : > { %p1889_p13 = scmp.ne.s32.totalorder %s221_s7, %s1888_s10  ;;  %p1896_p5 = scmp.lt.s32.totalorder %s221_s7, %s221_s7 }
  0x14   : > { %p2117_p11 = pnand %p1808_p9, %p2088_p1  ;;  %p1897_p7 = scmp.lt.s32.totalorder %s1888_s10, %s1888_s10 }
  0x16   : > { %p1879_p12 = pneg %p2117_p11  ;;  %p1898_p6 = por %p1897_p7, %p1896_p5 }
  0x18   : > { %p1891_p0 = pnand %p1889_p13, %p1879_p12 }
  0x1a   : > { %p1892_p3 = pneg %p1891_p0 }
  0x1c   : > { %p1899_p4 = pnand %p1898_p6, %p1892_p3 }
  0x1e   : > { %1902 = shalt.err (!%p1899_p4)
}
  0x1f   : > { %s2395_s11 = smov 128   ;;  %s2396_s12 = smov 8  }
  0x20   : > { %s2405_s2 = sld [smem:[#allocation12_spill]]  ;;  %p36_p4 = scmp.ge.s32.totalorder %s34_s9, 2 }
  0x21   : > { %s41_s15 = sadd.s32 1, %s2003_s20  ;;  %p48_p6 = scmp.ne.s32.totalorder %s2003_s20, %s1999_s19 }
  0x22   : > { %p49_p9 = scmp.eq.s32.totalorder %s2015_s23, 0  ;;  %s2422_s9 = smov (%p36_p4, %s34_s9), 0 }
  0x23   : > { %2406 = sst [smem:[#allocation11_spill]] %s2422_s9  ;;  %p2144_p13 = por %p2092_p2, %p48_p6 }
  0x24   : > { %p2138_p12 = por %p49_p9, %p48_p6  ;;  %s38_s24 = ssub.s32 %s2011_s22, %s2422_s9 }
  0x25   : > { %p1821_p0 = scmp.lt.s32.totalorder %s2015_s23, 2  ;;  %s248_s25 = sand.u32 1, %s2003_s20  }
  0x26   : > { %1811 = dma.hbm_to_vmem [thread:$0]  (!%p2117_p11), %s2405_s2, 256, %s221_s7, [#allocation6], %s2395_s11, %s2395_s11, %s2396_s12  }
  0x27   : > { %p39_p11 = scmp.eq.s32.totalorder %s38_s24, 0  ;;  %s1654_s6 = sshll.u32 %s248_s25, 4 }
  0x28   : > { %s1666_s8 = sshll.u32 %s2011_s22, 8  ;;  %s252_s11 = scalar_lea.vmem [#allocation2], %s1654_s6 }
  0x29   : > { %s2153_s7 = scalar_select %p39_p11, %s2003_s20, %s41_s15  }
  0x2a   : > { %s258_s14 = scalar_lea.hbm %s2388_s0, %s1666_s8  ;;  %s259_s12 = sshll.u32 %s252_s11, 4  ;;  %s260_s12 = int_to_ptr.vmem [resolvable:$true] %s259_s12 }
  0x2b   : > { %p2161_p2 = pnand %p1821_p0, %p2138_p12  ;;  %s249_s2 = scalar_lea.sflag [#allocation3], %s248_s25 }
  0x2c   : > { %s1916_s24 = scalar_lea.vmem %s260_s12, 256  ;;  %s2020_s15 = smov [#allocation2]  }
  0x2d   : > { %p1905_p3 = pneg %p2161_p2  ;;  %p1917_p5 = scmp.ne.s32.totalorder %s260_s12, %s1916_s24 }
  0x2e   : > { %s1921_s9 = sshll.u32 %s2020_s15, 4  ;;  %s1922_s9 = int_to_ptr.vmem [resolvable:$false] %s1921_s9 }
  0x2f   : > { %p1919_p7 = pnand %p1917_p5, %p1905_p3  ;;  %s1923_s8 = scalar_lea.vmem %s1922_s9, 512 }
  0x30   : > { %p1924_p6 = scmp.lt.s32.totalorder %s260_s12, %s1922_s9  ;;  %p1925_p9 = scmp.lt.s32.totalorder %s1923_s8, %s1916_s24 }
  0x31   : > { %p1920_p4 = pneg %p1919_p7 }
  0x32   : > { %p1926_p11 = por %p1925_p9, %p1924_p6 }
  0x34   : > { %p1927_p10 = pnand %p1926_p11, %p1920_p4 }
  0x36   : > { %1930 = shalt.err (!%p1927_p10)
}
  0x37   : > { %s2410_s11 = smov 8   ;;  %s2411_s16 = smov 128  }
  0x38   : > { %1815 = dma.hbm_to_vmem [thread:$0]  (!%p2161_p2), %s258_s14, 256, %s260_s12, %s249_s2, %s2411_s16, %s2411_s16, %s2410_s11  }
  0x39   : > { %271 = sbr.rel (%p2108_p8) target bundleno = 337 (0x151), region = 40  ;;  %s2175_s25 = sand.u32 (!%p2108_p8), 1, %s1999_s19  }
  0x3a   : > { %s1658_s9 = sshll.u32 (!%p2108_p8), %s2175_s25, 4  ;;  %s274_s6 = scalar_lea.sflag (!%p2108_p8), [#allocation3], %s2175_s25 }
  0x3b   : > { %s277_s10 = scalar_lea.vmem (!%p2108_p8), [#allocation2], %s1658_s9  ;;  %p2412_p10 = scmp.ne.s32.totalorder (!%p2108_p8), %s2401_s28, 0 }
  0x3e   : > { %1982 = dma.done.wait (%p2412_p10), %s274_s6, 256  }
  0x3f   : > { %1984 = vsyncadd (%p2412_p10), %s274_s6, 4294967040 }
  0x40   : > { %1986 = dma.done.wait (%p2088_p1), [#allocation6], 256  }
  0x41   : > { %1988 = vsyncadd (%p2088_p1), [#allocation6], 4294967040  ;;  %vm338_vm0 = vcmask 130048   ;;  %v337_v0 = vld [vmem:[%s2389_s1 + $0x8] sm:$0xff]  ;;  %v336_v1 = vld [vmem:[%s2389_s1] sm:$0xff]  ;;  %v1353_v50 = vlaneseq  ;;  %s1667_s24 = sshll.u32 %s2007_s21, 8 }
  0x42   : > { %v334_v2 = vld [vmem:[%s277_s10] sm:$0xff]  ;;  %v374_v3 = vand.u32 4294901760, %v337_v0  ;;  %v2195_v4 = vand.u32 4294901760, %v336_v1  ;;  %v335_v5 = vld [vmem:[%s277_s10 + $0x8] sm:$0xff]  ;;  %s320_s15 = scalar_lea.vmem [#allocation7], %s1658_s9  ;;  %vm1486_vm9 = vcmask 523264   ;;  %s2338_s6 = scalar_lea.hbm %s2393_s5, %s1667_s24 }
  0x43   : > { %v340_v6 = vsel %vm338_vm0, %v334_v2, 0  ;;  %v343_v7 = vsel %vm338_vm0, %v335_v5, 0  ;;  %v848_v16 = vld [vmem:[#allocation5 + $0x8] sm:$0xff]  ;;  %v847_v21 = vld [vmem:[#allocation5] sm:$0xff]  ;;  %v2262_v55 = vshrl.u32 %v1353_v50, 7  ;;  %s1505_s8 = sshll.u32 %s320_s15, 4  ;;  %s2340_s8 = int_to_ptr.vmem [resolvable:$true] %s1505_s8 }
  0x44   : > { %v2197_v8 = vand.u32 4294901760, %v340_v6  ;;  %1716 = vmatprep.subr.mxu0 %v374_v3  ;;  %v462_v9 = vsub.f32 %v337_v0, %v374_v3  ;;  %v2199_v10 = vand.u32 4294901760, %v343_v7  ;;  %v469_v11 = vsub.f32 %v336_v1, %v2195_v4  ;;  %v1351_v0 = vld [vmem:[%s2391_s3] sm:$0x1f]  ;;  %s1490_s21 = scalar_lea.sflag [#allocation4], %s2175_s25  ;;  %s1931_s9 = scalar_lea.vmem %s2340_s8, 256 }
  0x45   : > { %1717 = vmatpush3.msra.mxu0 %v374_v3  ;;  %v2219_v23 = vand.u32 4294901760, %v848_v16  ;;  %v2223_v28 = vand.u32 4294901760, %v847_v21  ;;  %v1358_v61 = vsub.s32 2, %v2262_v55  ;;  %v1381_v1 = vsub.s32 0, %v2262_v55  ;;  %p1932_p1 = scmp.ne.s32.totalorder %s2340_s8, %s1931_s9  ;;  %s2021_s10 = smov [#allocation7]  }
  0x46   : > { %v2203_v12 = vsub.f32 %v340_v6, %v2197_v8  ;;  %1727 = vmatprep.mubr.f32.mxu1 %v2197_v8  ;;  %1718 = vmatprep.subr.mxu0 %v2195_v4  ;;  %v463_v13 = vand.u32 4294901760, %v462_v9  ;;  %v2208_v14 = vsub.f32 %v343_v7, %v2199_v10  ;;  %v470_v15 = vand.u32 4294901760, %v469_v11  ;;  %s1935_s2 = sshll.u32 %s2021_s10, 4  ;;  %s1936_s2 = int_to_ptr.vmem [resolvable:$false] %s1935_s2 }
  0x47   : > { %1719 = vmatpush3.msra.mxu0 %v2195_v4  ;;  %v966_v30 = vsub.f32 %v848_v16, %v2219_v23  ;;  %v973_v31 = vsub.f32 %v847_v21, %v2223_v28  ;;  %v1410_v2 = vsub.s32 1, %v2262_v55  ;;  %v1468_v7 = vsub.s32 4, %v2262_v55  ;;  %p1933_p8 = pnand %p1932_p1, %p2144_p13  ;;  %s1937_s30 = scalar_lea.vmem %s1936_s2, 512 }
  0x48   : > { %v2212_v17 = vand.u32 4294901760, %v2203_v12  ;;  %v464_v18 = vsub.f32 %v462_v9, %v463_v13  ;;  %v2215_v19 = vand.u32 4294901760, %v2208_v14  ;;  %v471_v20 = vsub.f32 %v469_v11, %v470_v15  ;;  %1730 = vmatprep.subr.mxu0 %v462_v9  ;;  %p1938_p0 = scmp.lt.s32.totalorder %s2340_s8, %s1936_s2  ;;  %p1939_p2 = scmp.lt.s32.totalorder %s1937_s30, %s1931_s9 }
  0x49   : > { %v967_v32 = vand.u32 4294901760, %v966_v30  ;;  %v974_v33 = vand.u32 4294901760, %v973_v31  ;;  %vm1372_vm1 = vcmp.lt.s32.totalorder %v2262_v55, 2  ;;  %vm1401_vm2 = vcmp.lt.s32.totalorder %v2262_v55, 1  ;;  %p1934_p12 = pneg %p1933_p8 }
  0x4a   : > { %v415_v22 = vsub.f32 %v2203_v12, %v2212_v17  ;;  %v465_v24 = vand.u32 4294901760, %v464_v18  ;;  %v425_v25 = vsub.f32 %v2208_v14, %v2215_v19  ;;  %v472_v26 = vand.u32 4294901760, %v471_v20  ;;  %p1940_p3 = por %p1939_p2, %p1938_p0 }
  0x4b   : > { %v968_v34 = vsub.f32 %v966_v30, %v967_v32  ;;  %v975_v35 = vsub.f32 %v973_v31, %v974_v33  ;;  %vm1430_vm3 = vcmp.lt.s32.totalorder %v2262_v55, 7  ;;  %vm1459_vm4 = vcmp.lt.s32.totalorder %v2262_v55, 6 }
  0x4c   : > { %v416_v27 = vand.u32 4294901760, %v415_v22  ;;  %1723 = vmatprep.subr.mxu1 %v465_v24  ;;  %v426_v29 = vand.u32 4294901760, %v425_v25  ;;  %v2281_v21 = vrot.slane %v1351_v0, %v1468_v7  ;;  %vm1393_vm5 = vcmp.ge.s32.totalorder %v2262_v55, 2  ;;  %p1941_p5 = pnand %p1940_p3, %p1934_p12 }
  0x4d   : > { %1724 = vmatpush3.msra.mxu1 %v465_v24  ;;  %v969_v36 = vand.u32 4294901760, %v968_v34  ;;  %v976_v37 = vand.u32 4294901760, %v975_v35  ;;  %vm1422_vm6 = vcmp.ge.s32.totalorder %v2262_v55, 1 }
  0x4e   : > { %1720 = vmatprep.mubr.f32.mxu0 %v416_v27  ;;  %1725 = vmatprep.subr.mxu1 %v472_v26 }
  0x4f   : > { %1721 = vmatmul.mubr.f32.vlgmr.msra.gmra.mxu0 %v426_v29  ;;  %1726 = vmatpush3.msra.mxu1 %v472_v26  ;;  %v2284_v26 = vadd.s32 8, %v2262_v55 }
  0x50   : > { %1731 = vmatpush3.msra.mxu0 %v462_v9  ;;  %1728 = vmatmul.mubr.f32.vlgmr.msra.gmra.mxu1 %v2199_v10  ;;  %v1359_v9 = vrot.slane %v1351_v0, %v1358_v61 }
  0x51   : > { %1732 = vmatprep.subr.mxu0 %v469_v11  ;;  %1737 = vmatprep.subr.mxu1 %v374_v3  ;;  %vm1452_vm7 = vcmp.lt.s32.totalorder %v2284_v26, 15  ;;  %vm1481_vm8 = vcmp.lt.s32.totalorder %v2284_v26, 14 }
  0x52   : > { %1733 = vmatpush3.msra.mxu0 %v469_v11  ;;  %1734 = vmatprep.mubr.f32.mxu0 %v2203_v12  ;;  %v1382_v11 = vrot.slane %v1351_v0, %v1381_v1 }
  0x53   : > { %1738 = vmatpush3.msra.mxu1 %v374_v3  ;;  %1735 = vmatmul.mubr.f32.vlgmr.msra.gmra.mxu0 %v2208_v14 }
  0x54   : > { %1739 = vmatprep.subr.mxu1 %v2195_v4  ;;  %1744 = vmatprep.subr.mxu0 %v463_v13 }
  0x55   : > { %1740 = vmatpush3.msra.mxu1 %v2195_v4  ;;  %1741 = vmatprep.mubr.f32.mxu1 %v2212_v17 }
  0x56   : > { %1745 = vmatpush3.msra.mxu0 %v463_v13  ;;  %1742 = vmatmul.mubr.f32.vlgmr.msra.gmra.mxu1 %v2215_v19  ;;  %v1352_v13 = vld [vmem:[%s2392_s4] sm:$0x1f] }
  0x57   : > { %1746 = vmatprep.subr.mxu0 %v470_v15  ;;  %1751 = vmatprep.subr.mxu1 %v374_v3  ;;  %v1365_v25 = vrot.slane %v1352_v13, %v1358_v61  ;;  %v1417_v35 = vrot.slane %v1352_v13, %v1410_v2  ;;  %v1475_v50 = vrot.slane %v1352_v13, %v1468_v7 }
  0x58   : > { %1747 = vmatpush3.msra.mxu0 %v470_v15  ;;  %1748 = vmatprep.mubr.f32.mxu0 %v2197_v8 }
  0x59   : > { %1752 = vmatpush3.msra.mxu1 %v374_v3  ;;  %1749 = vmatmul.mubr.f32.vlgmr.msra.gmra.mxu0 %v2199_v10  ;;  %v1439_v3 = vsub.s32 3, %v2262_v55 }
  0x5a   : > { %1753 = vmatprep.subr.mxu1 %v2195_v4  ;;  %1758 = vmatprep.subr.mxu0 %v2219_v23 }
  0x5b   : > { %1754 = vmatpush3.msra.mxu1 %v2195_v4  ;;  %1755 = vmatprep.mubr.f32.mxu1 %v2197_v8  ;;  %v2278_v15 = vrot.slane %v1351_v0, %v1439_v3 }
  0x5c   : > { %1759 = vmatpush3.msra.mxu0 %v2219_v23  ;;  %1756 = vmatmul.mubr.f32.vlgmr.msra.gmra.mxu1 %v2199_v10 }
  0x5d   : > { %1760 = vmatprep.subr.mxu0 %v2223_v28  ;;  %1765 = vmatprep.subr.mxu1 %v969_v36 }
  0x5e   : > { %1761 = vmatpush3.msra.mxu0 %v2223_v28  ;;  %1762 = vmatprep.mubr.f32.mxu0 %v416_v27 }
  0x5f   : > { %1766 = vmatpush3.msra.mxu1 %v969_v36  ;;  %1763 = vmatmul.mubr.f32.vlgmr.msra.gmra.mxu0 %v426_v29 }
  0x60   : > { %1767 = vmatprep.subr.mxu1 %v976_v37  ;;  %1772 = vmatprep.subr.mxu0 %v966_v30 }
  0x61   : > { %1768 = vmatpush3.msra.mxu1 %v976_v37  ;;  %1769 = vmatprep.mubr.f32.mxu1 %v2197_v8 }
  0x62   : > { %1773 = vmatpush3.msra.mxu0 %v966_v30  ;;  %1770 = vmatmul.mubr.f32.vlgmr.msra.gmra.mxu1 %v2199_v10 }
  0x63   : > { %1774 = vmatprep.subr.mxu0 %v973_v31  ;;  %1779 = vmatprep.subr.mxu1 %v2219_v23 }
  0x64   : > { %1775 = vmatpush3.msra.mxu0 %v973_v31  ;;  %1776 = vmatprep.mubr.f32.mxu0 %v2203_v12  ;;  %v1388_v31 = vrot.slane %v1352_v13, %v1381_v1 }
  0x65   : > { %1780 = vmatpush3.msra.mxu1 %v2219_v23  ;;  %1777 = vmatmul.mubr.f32.vlgmr.msra.gmra.mxu0 %v2208_v14  ;;  %v1411_v14 = vrot.slane %v1351_v0, %v1410_v2 }
  0x66   : > { %1781 = vmatprep.subr.mxu1 %v2223_v28  ;;  %1786 = vmatprep.subr.mxu0 %v967_v32 }
  0x67   : > { %1782 = vmatpush3.msra.mxu1 %v2223_v28  ;;  %1783 = vmatprep.mubr.f32.mxu1 %v2212_v17 }
  0x68   : > { %1787 = vmatpush3.msra.mxu0 %v967_v32  ;;  %1784 = vmatmul.mubr.f32.vlgmr.msra.gmra.mxu1 %v2215_v19 }
  0x69   : > { %1788 = vmatprep.subr.mxu0 %v974_v33  ;;  %1793 = vmatprep.subr.mxu1 %v2219_v23 }
  0x6a   : > { %1789 = vmatpush3.msra.mxu0 %v974_v33  ;;  %1790 = vmatprep.mubr.f32.mxu0 %v2197_v8 }
  0x6b   : > { %1794 = vmatpush3.msra.mxu1 %v2219_v23  ;;  %1791 = vmatmul.mubr.f32.vlgmr.msra.gmra.mxu0 %v2199_v10 }
  0x6c   : > { %1795 = vmatprep.subr.mxu1 %v2223_v28  ;;  %1797 = vmatprep.mubr.f32.mxu1 %v2197_v8 }
  0x6d   : > { %1796 = vmatpush3.msra.mxu1 %v2223_v28 }
  0x6e   : > { %1798 = vmatmul.mubr.f32.vlgmr.msra.gmra.mxu1 %v2199_v10 }
 0x10f   : > { %v1722_v38 = vpop.f32.mrf.mxu0 }
 0x110   : > { %v1729_v40 = vpop.f32.mrf.mxu1 }
 0x111   : > { %v418_v39 = vpop.f32.mrf.mxu0  ;;  %v516_v46 = vadd.f32 %v1729_v40, %v1722_v38 }
 0x112   : > { %v509_v41 = vpop.f32.mrf.mxu1 }
 0x113   : > { %v1736_v42 = vpop.f32.mrf.mxu0  ;;  %v510_v43 = vadd.f32 %v509_v41, %v418_v39 }
 0x114   : > { %v599_v51 = vadd.f32 %v1736_v42, %v516_v46 }
 0x115   : > { %v591_v44 = vpop.f32.mrf.mxu0 }
 0x116   : > { %v1743_v45 = vpop.f32.mrf.mxu1  ;;  %v592_v48 = vadd.f32 %v591_v44, %v510_v43 }
 0x117   : > { %v682_v57 = vadd.f32 %v1743_v45, %v599_v51  ;;  %v1446_v45 = vrot.slane %v1352_v13, %v1439_v3 }
 0x118   : > { %v673_v47 = vpop.f32.mrf.mxu1 }
 0x119   : > { %v1750_v49 = vpop.f32.mrf.mxu0  ;;  %v674_v54 = vadd.f32 %v673_v47, %v592_v48 }
 0x11a   : > { %v765_v63 = vadd.f32 %v1750_v49, %v682_v57 }
 0x11b   : > { %v758_v52 = vpop.f32.mrf.mxu0 }
 0x11c   : > { %v1757_v53 = vpop.f32.mrf.mxu1  ;;  %v759_v59 = vadd.f32 %v758_v52, %v674_v54 }
 0x11d   : > { %v844_v10 = vadd.f32 %v1757_v53, %v765_v63 }
 0x11e   : > { %v837_v56 = vpop.f32.mrf.mxu1 }
 0x11f   : > { %v1764_v58 = vpop.f32.mrf.mxu0  ;;  %v838_v6 = vadd.f32 %v837_v56, %v759_v59  ;;  %v1371_v27 = vrot.slane %v844_v10, 6  ;;  %v1400_v28 = vrot.slane %v844_v10, 7  ;;  %v1429_v32 = vrot.slane %v844_v10, 1 }
 0x120   : > { %v1361_v46 = vmul.f32 %v1359_v9, %v844_v10  ;;  %v1458_v47 = vrot.slane %v844_v10, 2 }
 0x121   : > { %v922_v60 = vpop.f32.mrf.mxu0  ;;  %v1370_v19 = vrot.slane %v838_v6, 6  ;;  %v1399_v20 = vrot.slane %v838_v6, 7  ;;  %v1428_v29 = vrot.slane %v838_v6, 1  ;;  %v1457_v39 = vrot.slane %v838_v6, 2 }
 0x122   : > { %v1771_v62 = vpop.f32.mrf.mxu1  ;;  %v1360_v51 = vmul.f32 %v1359_v9, %v838_v6 }
 0x123   : > { %v1020_v4 = vadd.f32 %v1771_v62, %v1764_v58  ;;  %v1373_v36 = vsel %vm1372_vm1, %v1370_v19, %v1371_v27  ;;  %v1374_v37 = vsel %vm1372_vm1, %v1371_v27, %v1370_v19  ;;  %v1403_v38 = vsel %vm1401_vm2, %v1400_v28, %v1399_v20 }
 0x124   : > { %v1013_v5 = vpop.f32.mrf.mxu1  ;;  %v1402_v42 = vsel %vm1401_vm2, %v1399_v20, %v1400_v28  ;;  %v1432_v48 = vsel %vm1430_vm3, %v1429_v32, %v1428_v29  ;;  %v1383_v52 = vmul.f32 %v1382_v11, %v1374_v37  ;;  %v1384_v53 = vmul.f32 %v1382_v11, %v1373_v36 }
 0x125   : > { %v1778_v8 = vpop.f32.mrf.mxu0  ;;  %v1014_v16 = vadd.f32 %v1013_v5, %v922_v60  ;;  %v1412_v54 = vmul.f32 %v1411_v14, %v1403_v38  ;;  %v1413_v56 = vmul.f32 %v1411_v14, %v1402_v42  ;;  %v1431_v57 = vsel %vm1430_vm3, %v1428_v29, %v1429_v32 }
 0x126   : > { %v1103_v17 = vadd.f32 %v1778_v8, %v1020_v4  ;;  %v1461_v58 = vsel %vm1459_vm4, %v1458_v47, %v1457_v39  ;;  %v1442_v60 = vmul.f32 %v2278_v15, %v1432_v48  ;;  %v1460_v61 = vsel %vm1459_vm4, %v1457_v39, %v1458_v47 }
 0x127   : > { %v1095_v12 = vpop.f32.mrf.mxu0  ;;  %v1471_v4 = vmul.f32 %v2281_v21, %v1461_v58  ;;  %v1470_v42 = vmul.f32 %v2281_v21, %v1460_v61 }
 0x128   : > { %v1785_v18 = vpop.f32.mrf.mxu1  ;;  %v1096_v22 = vadd.f32 %v1095_v12, %v1014_v16 }
 0x129   : > { %v1186_v23 = vadd.f32 %v1785_v18, %v1103_v17 }
 0x12a   : > { %v1177_v24 = vpop.f32.mrf.mxu1 }
 0x12b   : > { %v1792_v30 = vpop.f32.mrf.mxu0  ;;  %v1178_v33 = vadd.f32 %v1177_v24, %v1096_v22 }
 0x12c   : > { %v1269_v34 = vadd.f32 %v1792_v30, %v1186_v23 }
 0x12d   : > { %v1262_v40 = vpop.f32.mrf.mxu0 }
 0x12e   : > { %v1799_v41 = vpop.f32.mrf.mxu1  ;;  %v1263_v43 = vadd.f32 %v1262_v40, %v1178_v33 }
 0x12f   : > { %v1348_v44 = vadd.f32 %v1799_v41, %v1269_v34 }
 0x130   : > { %v1341_v49 = vpop.f32.mrf.mxu1 }
 0x131   : > { %v1342_v59 = vadd.f32 %v1341_v49, %v1263_v43  ;;  %v1367_v62 = vmul.f32 %v1365_v25, %v1348_v44  ;;  %v1376_v63 = vrot.slane %v1348_v44, 6  ;;  %v1405_v0 = vrot.slane %v1348_v44, 7 }
 0x132   : > { %v1434_v5 = vrot.slane %v1348_v44, 1  ;;  %v1463_v8 = vrot.slane %v1348_v44, 2 }
 0x133   : > { %v1375_v1 = vrot.slane %v1342_v59, 6  ;;  %v1404_v2 = vrot.slane %v1342_v59, 7  ;;  %v1433_v3 = vrot.slane %v1342_v59, 1  ;;  %v1366_v6 = vmul.f32 %v1365_v25, %v1342_v59 }
 0x134   : > { %v1462_v7 = vrot.slane %v1342_v59, 2  ;;  %v1369_v17 = vsub.f32 %v1361_v46, %v1367_v62 }
 0x135   : > { %v1377_v9 = vsel %vm1372_vm1, %v1375_v1, %v1376_v63  ;;  %v1378_v10 = vsel %vm1372_vm1, %v1376_v63, %v1375_v1  ;;  %v1406_v11 = vsel %vm1401_vm2, %v1404_v2, %v1405_v0  ;;  %v1407_v14 = vsel %vm1401_vm2, %v1405_v0, %v1404_v2 }
 0x136   : > { %v1389_v12 = vmul.f32 %v1388_v31, %v1378_v10  ;;  %v1390_v13 = vmul.f32 %v1388_v31, %v1377_v9  ;;  %v1419_v16 = vmul.f32 %v1417_v35, %v1406_v11  ;;  %v1418_v18 = vmul.f32 %v1417_v35, %v1407_v14 }
 0x137   : > { %v1435_v19 = vsel %vm1430_vm3, %v1433_v3, %v1434_v5  ;;  %v1436_v20 = vsel %vm1430_vm3, %v1434_v5, %v1433_v3  ;;  %v1368_v22 = vsub.f32 %v1360_v51, %v1366_v6  ;;  %v1464_v25 = vsel %vm1459_vm4, %v1462_v7, %v1463_v8 }
 0x138   : > { %v1391_v23 = vsub.f32 %v1383_v52, %v1389_v12  ;;  %v1392_v24 = vsub.f32 %v1384_v53, %v1390_v13  ;;  %v1420_v27 = vsub.f32 %v1412_v54, %v1418_v18  ;;  %v1447_v28 = vmul.f32 %v1446_v45, %v1435_v19 }
 0x139   : > { %v1448_v29 = vmul.f32 %v1446_v45, %v1436_v20  ;;  %v1465_v30 = vsel %vm1459_vm4, %v1463_v8, %v1462_v7  ;;  %v1421_v33 = vsub.f32 %v1413_v56, %v1419_v16  ;;  %v1441_v35 = vmul.f32 %v2278_v15, %v1431_v57 }
 0x13a   : > { %v1395_v31 = vsel %vm1393_vm5, %v1391_v23, 0.0  ;;  %v1398_v32 = vadd.f32 %v1392_v24, %v1369_v17  ;;  %v1477_v34 = vmul.f32 %v1475_v50, %v1465_v30  ;;  %v1476_v38 = vmul.f32 %v1475_v50, %v1464_v25 }
 0x13b   : > { %v1397_v36 = vadd.f32 %v1395_v31, %v1368_v22  ;;  %v1450_v37 = vsub.f32 %v1442_v60, %v1448_v29  ;;  %v1424_v39 = vsel %vm1422_vm6, %v1420_v27, 0.0  ;;  %v1449_v44 = vsub.f32 %v1441_v35, %v1447_v28 }
 0x13c   : > { %v1427_v40 = vadd.f32 %v1421_v33, %v1398_v32  ;;  %v1479_v41 = vsub.f32 %v1471_v4, %v1477_v34  ;;  %v1478_v46 = vsub.f32 %v1470_v42, %v1476_v38 }
 0x13d   : > { %v1426_v43 = vadd.f32 %v1424_v39, %v1397_v36  ;;  %v1454_v45 = vsel %vm1452_vm7, %v1450_v37, 0.0 }
 0x13e   : > { %v1456_v15 = vadd.f32 %v1454_v45, %v1427_v40  ;;  %v1483_v47 = vsel %vm1481_vm8, %v1479_v41, 0.0 }
 0x13f   : > { %v1455_v55 = vadd.f32 %v1449_v44, %v1426_v43 }
 0x140   : > { %v1485_v48 = vadd.f32 %v1483_v47, %v1456_v15 }
 0x141   : > { %v1484_v21 = vadd.f32 %v1478_v46, %v1455_v55 }
 0x142   : > { %1488 = vst.msk [vmem:[%s320_s15 + $0x8] sm:$0xff] %vm1486_vm9, %v1485_v48 }
 0x143   : > { %1487 = vst.msk [vmem:[%s320_s15] sm:$0xff] %vm1486_vm9, %v1484_v21 }
 0x144   : > { %1944 = shalt.err (!%p1941_p5)
}
 0x145   : > { %s1945_s12 = scalar_lea.hbm %s2338_s6, 256  ;;  %s1949_s28 = scalar_lea.hbm %s2393_s5, 512 }
 0x146   : > { %p1946_p7 = scmp.ne.s32.totalorder %s2338_s6, %s1945_s12  ;;  %p1950_p9 = scmp.lt.s32.totalorder %s2338_s6, %s2393_s5 }
 0x147   : > { %p1951_p11 = scmp.lt.s32.totalorder %s1949_s28, %s1945_s12 }
 0x148   : > { %p1947_p4 = pnand %p1946_p7, %p2144_p13 }
 0x149   : > { %p1952_p10 = por %p1951_p11, %p1950_p9 }
 0x14a   : > { %p1948_p6 = pneg %p1947_p4 }
 0x14c   : > { %p1953_p1 = pnand %p1952_p10, %p1948_p6 }
 0x14e   : > { %1956 = shalt.err (!%p1953_p1)
}
 0x14f   : > { %s2022_s24 = smov 128   ;;  %s2023_s15 = smov 8  }
 0x150   : > { %1806 = dma.vmem_to_hbm [thread:$0]  (%p2144_p13), %s2340_s8, 256, %s2338_s6, %s1490_s21, %s2022_s24, %s2022_s24, %s2023_s15  }
 0x151 PF: > { %s1520_s11 = sand.u32 1, %s1995_s18   ;;  %p2413_p8 = scmp.ne.s32.totalorder %s2402_s29, 0 }
 0x152   : > { %p2414_p12 = scmp.ge.s32.totalorder %s2015_s23, 2  ;;  %s1521_s16 = scalar_lea.sflag [#allocation4], %s1520_s11 }
 0x154   : > { %p1817_p0 = pnand %p2414_p12, %p2413_p8 }
 0x156   : > { %p1818_p2 = pneg %p1817_p0 }
 0x158   : > { %1990 = dma.done.wait (%p1818_p2), %s1521_s16, 256  }
 0x159   : > { %1992 = vsyncadd (%p1818_p2), %s1521_s16, 4294967040  ;;  %s22_s23 = sadd.s32 1, %s2015_s23   ;;  %s2415_s17 = sld [smem:[#allocation11_spill]] }
 0x15a   : > { %p19_p3 = scmp.ge.s32.totalorder %s22_s23, 4   ;;  %s2416_s18 = smov %s1999_s19 }
 0x15b   : > { %s2417_s19 = smov %s2003_s20  ;;  %s2418_s20 = smov %s2153_s7 }
 0x15c   : > { %s2419_s21 = smov %s2011_s22  ;;  %21 = sbr.rel (!%p19_p3) target bundleno = 9 (0x9), region = 99 }
 0x15f   : > { %s2420_s22 = smov %s2415_s17 }
 0x161   :  { %1526 = vsyncpa [#allocation3], 1 }
 0x162   :  { %1528 = vsyncpa [#allocation3 + $0x1], 1 }
 0x163   :  { %1529 = vsyncpa [#allocation6], 1 }
 0x164   :  { %1530 = vsyncpa [#allocation4], 1 }
 0x165   :  { %1532 = vsyncpa [#allocation4 + $0x1], 1 }

</bundles_post_ra>
